<compile_context>
chip_gen: v6e
topology: v6e:2x2x1
jax: 0.10.0
libtpu: 0.0.40
codegen_flags: <defaults>
</compile_context>

<pallas_src>
import numpy as np
import jax
import jax.numpy as jnp
from jax.experimental import pallas as pl
from jax.experimental.pallas import tpu as pltpu

OUT_DIM = 10
LANE = 128
SUBLANE = 8


# -----------------------------------------------------------------------------
# Deterministic parameter construction (host-side, mirrors the module __init__)
# -----------------------------------------------------------------------------
class LFSR:
    """Deterministic 16-bit Galois LFSR producing +/- 2^-k 'fixed-point shift'
    values.
    TODO(synk): the original LFSR class is not provided in the source module;
    this is a deterministic stand-in with the same value structure."""

    def __init__(self, seed=69):
        self.state = (seed & 0xFFFF) or 1

    def _next(self):
        lsb = self.state & 1
        self.state >>= 1
        if lsb:
            self.state ^= 0xB400
        return self.state

    def gen_fxp_shift(self, n_bits):
        v = self._next()
        shift = v % n_bits
        sign = 1.0 if (v >> 4) & 1 else -1.0
        return sign * (2.0 ** (-shift))


def _cyclemask(rows, cols, degree):
    m = np.zeros((rows, cols), dtype=bool)
    for i in range(1, degree):
        m |= np.roll(np.eye(rows, cols), i, axis=0).astype(bool)
    return m


def _linear_init(key, fan_in, fan_out):
    """nn.Linear default init: U(-1/sqrt(fan_in), 1/sqrt(fan_in))."""
    kw, kb = jax.random.split(key)
    bound = 1.0 / np.sqrt(fan_in)
    w = jax.random.uniform(kw, (fan_out, fan_in), jnp.float32, -bound, bound)
    b = jax.random.uniform(kb, (fan_out,), jnp.float32, -bound, bound)
    return w, b


def make_params(n_bands, n_feats, n_bits, spec_rad, mix_degree, rc_degree,
                seed=69, key=None):
    assert mix_degree > 1, "degenerate mix_degree<=1 branch not exercised here"

    # LowBitMixIn.mixer : (n_feats, n_bands)
    lfsr = LFSR(seed)
    mask = _cyclemask(n_feats, n_bands, mix_degree)
    mixer = np.zeros((n_feats, n_bands), np.float32)
    mixer[mask] = np.array(
        [lfsr.gen_fxp_shift(n_bits) for _ in range(int(mask.sum()))], np.float32)

    # LowBit_RC.feature_pushforward : (n_feats, n_feats)
    lfsr = LFSR(seed)
    mask = _cyclemask(n_feats, n_feats, rc_degree)
    A = np.zeros((n_feats, n_feats), np.float32)
    A[mask] = np.array(
        [lfsr.gen_fxp_shift(n_bits) for _ in range(int(mask.sum()))], np.float32)
    if spec_rad > 0:
        # TODO(synk): original uses torch.linalg.eigvals(A)[0] (ordering is
        # library-dependent); we normalise by the spectral radius (max |ev|),
        # done host-side (eig has no TPU op).
        ev = np.linalg.eigvals(A)
        A = (spec_rad * A / np.max(np.abs(ev))).astype(np.float32)

    if key is None:
        key = jax.random.PRNGKey(1)
    k1, k2, k3, k4 = jax.random.split(key, 4)
    w_out, b_out = _linear_init(k1, n_feats, OUT_DIM)          # rc.lin_out
    w_byp, b_byp = _linear_init(k2, n_feats, OUT_DIM)          # rc_bypass
    w_ff1, b_ff1 = _linear_init(k3, n_bands, n_bands // 2)     # ff1
    w_ff2, b_ff2 = _linear_init(k4, n_bands // 2, OUT_DIM)     # ff2

    return dict(
        mixer=jnp.asarray(mixer), w_rc=jnp.asarray(A),
        w_out=w_out, b_out=b_out, w_byp=w_byp, b_byp=b_byp,
        w_ff1=w_ff1, b_ff1=b_ff1, w_ff2=w_ff2, b_ff2=b_ff2,
    )


def prepare_kernel_params(params):
    """One-time host-side prep:
      * transpose weights for lane contraction,
      * fold the Clipper slope (2x) into the reservoir weights and the mixer,
      * pre-compose the bypass through the mixer and concatenate it with the
        ff1 weight into one fused x-contraction,
      * zero-pad all 10-wide output dims (and the ff hidden dim) to 128 lanes.
    """
    mixer_t = params["mixer"].T                              # (Nb, F)
    n_bands, F = mixer_t.shape
    H = params["w_ff1"].shape[0]

    def pad_lanes(w_t):                                       # (K, n) -> (K, 128)
        K, n = w_t.shape
        return jnp.zeros((K, LANE), jnp.float32).at[:, :n].set(w_t)

    def pad_bias(b):                                          # (n,) -> (1, 128)
        return jnp.zeros((1, LANE), jnp.float32).at[0, :b.shape[0]].set(b)

    w_out_t = pad_lanes(params["w_out"].T)                    # (F, 128)
    w_byp_t = pad_lanes(params["w_byp"].T)                    # (F, 128)
    w_ff1_t = pad_lanes(params["w_ff1"].T)                    # (Nb, 128)
    # ff2: pad contraction dim H -> 128 rows and output -> 128 lanes
    w_ff2_t = jnp.zeros((LANE, LANE), jnp.float32).at[:H, :OUT_DIM].set(
        params["w_ff2"].T)                                    # (128, 128)

    # bypass pre-composed through the mixer: mixed @ W_byp^T == x @ (mixer^T @ W_byp^T)
    byp_fused = mixer_t @ w_byp_t                             # (Nb, 128)

    # fused x-contraction weight / bias: [ ff1 | bypass ]
    w_cat = jnp.concatenate([w_ff1_t, byp_fused], axis=1)     # (Nb, 256)
    b_cat = jnp.concatenate([pad_bias(params["b_ff1"]),
                             pad_bias(params["b_byp"])], axis=1)   # (1, 256)

    return dict(
        mixer2_t=(2.0 * mixer_t),                             # (Nb, F) slope folded
        w_rc2=(2.0 * params["w_rc"]),                         # (F, F)  slope folded
        w_cat=w_cat, b_cat=b_cat,
        w_out_t=w_out_t, b_out=pad_bias(params["b_out"]),
        w_ff2_t=w_ff2_t, b_ff2=pad_bias(params["b_ff2"]),
    )


# -----------------------------------------------------------------------------
# Pallas kernel
# -----------------------------------------------------------------------------
def _leaky(x):
    # F.leaky_relu(x, 1/16)
    return jnp.where(x >= 0, x, x * (1.0 / 16.0))


def _make_kernel(Tc, B_pad, T):
    inv_T = 1.0 / float(T)

    def kernel(x_ref,          # (Tc*B_pad, Nb)  flattened time-major chunk
               mixer2_t_ref,   # (Nb, F)   2*mixer^T
               w_rc2_ref,      # (F, F)    2*feature_pushforward
               w_cat_ref,      # (Nb, 256) [ff1 | bypass-through-mixer]
               b_cat_ref,      # (1, 256)
               w_out_t_ref,    # (F, 128)
               b_out_ref,      # (1, 128)
               w_ff2_t_ref,    # (128, 128)
               b_ff2_ref,      # (1, 128)
               out_ref,        # (B_pad, 128) running sum, grid-resident
               feats_sc):      # (B_pad, F)   reservoir state (persistent)
        k = pl.program_id(0)

        @pl.when(k == 0)
        def _init():
            feats_sc[...] = jnp.zeros_like(feats_sc)
            out_ref[...] = jnp.zeros_like(out_ref)

        x = x_ref[...]                                          # (TcB, Nb)

        # --- fused x-contractions (batched over the whole chunk) -------------
        mixed2 = jnp.dot(x, mixer2_t_ref[...],
                         preferred_element_type=jnp.float32)    # (TcB, F) = 2*mixed
        fused = jnp.dot(x, w_cat_ref[...],
                        preferred_element_type=jnp.float32) + b_cat_ref[...]
        h = _leaky(fused[:, :LANE])                             # (TcB, 128) ff1 act
        byp = fused[:, LANE:2 * LANE]                           # (TcB, 128) bypass

        # --- reservoir recurrence: f_t = tanh(f_{t-1} @ (2W) + 2*mixed_t) ----
        # fully unrolled, feats kept in registers; no per-step VMEM stores.
        W2 = w_rc2_ref[...]
        feats = feats_sc[...]                                   # (B_pad, F)
        feats_steps = []
        for t in range(Tc):
            m = mixed2[t * B_pad:(t + 1) * B_pad, :]            # static 8-row slice
            feats = jnp.tanh(
                jnp.dot(feats, W2, preferred_element_type=jnp.float32) + m)
            feats_steps.append(feats)
        feats_sc[...] = feats
        resbuf = jnp.concatenate(feats_steps, axis=0)           # (TcB, F)

        # --- batched read-out / feed-forward (off the serial chain) ----------
        rc_out = jnp.dot(resbuf, w_out_t_ref[...],
                         preferred_element_type=jnp.float32) + b_out_ref[...]
        ff = _leaky(jnp.dot(h, w_ff2_t_ref[...],
                            preferred_element_type=jnp.float32) + b_ff2_ref[...])

        contrib = jnp.maximum(_leaky(rc_out) + _leaky(byp) + ff, 0.0)  # (TcB,128)

        # grouped time-sum within the chunk: tile-aligned reshape + reduce
        csum = contrib.reshape(Tc, B_pad, LANE).sum(axis=0)      # (B_pad, 128)
        out_ref[...] += csum * inv_T

    return kernel


def _pick_chunk_t(T, B_pad, max_rows=128):
    """Largest chunk dividing T with <= max_rows flattened rows (keeps the
    register-resident chunk buffers to ~16 vregs per 128-lane value)."""
    best = 1
    for tc in range(1, T + 1):
        if T % tc == 0 and tc * B_pad <= max_rows:
            best = tc
    return best


def fsdd_pipeline_v2(bands, kparams, *, chunk_t=None):
    """FSDDPipelineV2.forward.  `bands`: (B, n_bands, T) f32 -> (B, 10) f32."""
    B, Nb, T = bands.shape
    F = kparams["mixer2_t"].shape[1]

    # pad batch to a full sublane tile so the recurrence LHS is 8 rows
    B_pad = ((B + SUBLANE - 1) // SUBLANE) * SUBLANE
    bands_p = jnp.zeros((B_pad, Nb, T), jnp.float32).at[:B].set(
        bands.astype(jnp.float32))

    Tc = chunk_t if chunk_t is not None else _pick_chunk_t(T, B_pad)
    assert T % Tc == 0, "chunk_t must divide T"
    n_chunks = T // Tc

    # time-major flatten: row index = t*B_pad + b
    x2d = jnp.transpose(bands_p, (2, 0, 1)).reshape(T * B_pad, Nb)

    args = (
        x2d,
        kparams["mixer2_t"], kparams["w_rc2"],
        kparams["w_cat"], kparams["b_cat"],
        kparams["w_out_t"], kparams["b_out"],
        kparams["w_ff2_t"], kparams["b_ff2"],
    )

    def const2d(shape):
        return pl.BlockSpec(shape, lambda k: (0, 0))

    in_specs = [pl.BlockSpec((Tc * B_pad, Nb), lambda k: (k, 0))] + [
        const2d((Nb, F)),            # mixer2_t
        const2d((F, F)),             # w_rc2
        const2d((Nb, 2 * LANE)),     # w_cat
        const2d((1, 2 * LANE)),      # b_cat
        const2d((F, LANE)),          # w_out_t
        const2d((1, LANE)),          # b_out
        const2d((LANE, LANE)),       # w_ff2_t
        const2d((1, LANE)),          # b_ff2
    ]

    out = pl.pallas_call(
        _make_kernel(Tc, B_pad, T),
        out_shape=jax.ShapeDtypeStruct((B_pad, LANE), jnp.float32),
        grid_spec=pltpu.PrefetchScalarGridSpec(
            num_scalar_prefetch=0,
            grid=(n_chunks,),
            in_specs=in_specs,
            out_specs=pl.BlockSpec((B_pad, LANE), lambda k: (0, 0)),
            scratch_shapes=[pltpu.VMEM((B_pad, F), jnp.float32)]),
        compiler_params=pltpu.CompilerParams(
            dimension_semantics=("arbitrary",),   # sequential reservoir chunks
            # tiny working set; modest explicit limit leaves headroom on all
            # generations (incl. v7x's 64 MiB VMEM)
            vmem_limit_bytes=16 * 1024 * 1024),
    )(*args)
    return out[:B, :OUT_DIM]


# -----------------------------------------------------------------------------
# Pure-JAX reference (sanity check against the kernel)
# -----------------------------------------------------------------------------
def reference_forward(bands, params):
    mixer, W = params["mixer"], params["w_rc"]
    mixed = jnp.einsum("fn,bnt->bft", mixer, bands)          # (B, F, T)
    B, F, T = mixed.shape
    leaky = lambda v: jnp.where(v >= 0, v, v / 16.0)

    feats = jnp.zeros((B, F), jnp.float32)
    outs = []
    for t in range(T):
        feats = jnp.tanh(2.0 * (feats @ W + mixed[..., t]))
        outs.append(feats)
    resbuf = jnp.stack(outs, axis=-1)                        # (B, F, T)

    rc_out = (jnp.einsum("bft,of->bot", resbuf, params["w_out"])
              + params["b_out"][None, :, None])
    byp = (jnp.einsum("bft,of->bot", mixed, params["w_byp"])
           + params["b_byp"][None, :, None])
    res = leaky(rc_out) + leaky(byp)

    h = leaky(jnp.einsum("bnt,hn->bht", bands, params["w_ff1"])
              + params["b_ff1"][None, :, None])
    ff = leaky(jnp.einsum("bht,oh->bot", h, params["w_ff2"])
               + params["b_ff2"][None, :, None])
    return jnp.mean(jnp.maximum(res + ff, 0.0), axis=-1)     # (B, 10)


# -----------------------------------------------------------------------------
if __name__ == "__main__":
    B, N_BANDS, N_FEATS, T = 2, 16, 32, 8
    N_BITS, SPEC_RAD, MIX_DEG, RC_DEG, SEED = 4, 0.9, 2, 3, 69

    params = make_params(N_BANDS, N_FEATS, N_BITS, SPEC_RAD,
                         MIX_DEG, RC_DEG, SEED, key=jax.random.PRNGKey(1))
    kparams = prepare_kernel_params(params)

    bands = jax.random.normal(jax.random.PRNGKey(0), (B, N_BANDS, T), jnp.float32)

    # chunk_t=4 -> 2-step grid (exercises init / persistent-state / accumulate)
    out = fsdd_pipeline_v2(bands, kparams, chunk_t=4)
    out = jax.block_until_ready(out)

    ref = jax.block_until_ready(reference_forward(bands, params))
    err = float(jnp.max(jnp.abs(out - ref)))
    if not np.isfinite(err) or err > 1e-2:
        raise SystemExit(f"kernel/reference mismatch: max abs err = {err}")

    print("KERNEL_OK")
</pallas_src>

<mosaic_0001>
module attributes {stable_mosaic.version = 11 : i64} {
  func.func @kernel(%arg0: i32, %arg1: memref<32x16xf32, #tpu.memory_space<vmem>>, %arg2: memref<16x32xf32, #tpu.memory_space<vmem>>, %arg3: memref<32x32xf32, #tpu.memory_space<vmem>>, %arg4: memref<16x256xf32, #tpu.memory_space<vmem>>, %arg5: memref<1x256xf32, #tpu.memory_space<vmem>>, %arg6: memref<32x128xf32, #tpu.memory_space<vmem>>, %arg7: memref<1x128xf32, #tpu.memory_space<vmem>>, %arg8: memref<128x128xf32, #tpu.memory_space<vmem>>, %arg9: memref<1x128xf32, #tpu.memory_space<vmem>>, %arg10: memref<8x128xf32, #tpu.memory_space<vmem>>, %arg11: memref<8x32xf32, #tpu.memory_space<vmem>>) attributes {dimension_semantics = [#tpu.dimension_semantics<arbitrary>], iteration_bounds = array<i64: 2>, scalar_prefetch = 0 : i64, scratch_operands = 1 : i64, tpu.core_type = #tpu.core_type<tc>, window_params = [{transform_indices = @transform_0, window_bounds = array<i64: 32, 16>}, {pipeline_mode = #tpu.pipeline_mode<synchronous>, transform_indices = @transform_1, window_bounds = array<i64: 16, 32>}, {pipeline_mode = #tpu.pipeline_mode<synchronous>, transform_indices = @transform_2, window_bounds = array<i64: 32, 32>}, {pipeline_mode = #tpu.pipeline_mode<synchronous>, transform_indices = @transform_3, window_bounds = array<i64: 16, 256>}, {pipeline_mode = #tpu.pipeline_mode<synchronous>, transform_indices = @transform_4, window_bounds = array<i64: 1, 256>}, {pipeline_mode = #tpu.pipeline_mode<synchronous>, transform_indices = @transform_5, window_bounds = array<i64: 32, 128>}, {pipeline_mode = #tpu.pipeline_mode<synchronous>, transform_indices = @transform_6, window_bounds = array<i64: 1, 128>}, {pipeline_mode = #tpu.pipeline_mode<synchronous>, transform_indices = @transform_7, window_bounds = array<i64: 128, 128>}, {pipeline_mode = #tpu.pipeline_mode<synchronous>, transform_indices = @transform_8, window_bounds = array<i64: 1, 128>}, {pipeline_mode = #tpu.pipeline_mode<synchronous>, transform_indices = @transform_9, window_bounds = array<i64: 8, 128>}]} {
    %c0_i32 = arith.constant 0 : i32
    %0 = arith.cmpi eq, %arg0, %c0_i32 : i32
    %1 = arith.extui %0 : i1 to i32
    %c0_i32_0 = arith.constant 0 : i32
    %2 = arith.cmpi ne, %1, %c0_i32_0 : i32
    scf.if %2 {
      %cst_44 = arith.constant 0.000000e+00 : f32
      %74 = vector.broadcast %cst_44 : f32 to vector<8x32xf32>
      %c0_45 = arith.constant 0 : index
      %c0_46 = arith.constant 0 : index
      %75 = vector.load %arg11[%c0_45, %c0_46] : memref<8x32xf32, #tpu.memory_space<vmem>>, vector<8x32xf32>
      tpu.vector_store %arg11[%c0_45, %c0_46], %74 {strides = array<i32>} : memref<8x32xf32, #tpu.memory_space<vmem>>, vector<8x32xf32>,
      %cst_47 = arith.constant 0.000000e+00 : f32
      %76 = vector.broadcast %cst_47 : f32 to vector<8x128xf32>
      %c0_48 = arith.constant 0 : index
      %c0_49 = arith.constant 0 : index
      %77 = vector.load %arg10[%c0_48, %c0_49] : memref<8x128xf32, #tpu.memory_space<vmem>>, vector<8x128xf32>
      tpu.vector_store %arg10[%c0_48, %c0_49], %76 {strides = array<i32>} : memref<8x128xf32, #tpu.memory_space<vmem>>, vector<8x128xf32>,
    } else {
    }
    %c0 = arith.constant 0 : index
    %c0_1 = arith.constant 0 : index
    %3 = vector.load %arg1[%c0, %c0_1] : memref<32x16xf32, #tpu.memory_space<vmem>>, vector<32x16xf32>
    %c0_2 = arith.constant 0 : index
    %c0_3 = arith.constant 0 : index
    %4 = vector.load %arg2[%c0_2, %c0_3] : memref<16x32xf32, #tpu.memory_space<vmem>>, vector<16x32xf32>
    %cst = arith.constant dense<0.000000e+00> : vector<32x32xf32>
    %5 = tpu.matmul %3, %4, %cst {dimension_numbers = #tpu.dot_dimension_numbers<[1], [0], [0], [1], [0, 0, 1, 1], [], []>} : vector<32x16xf32>, vector<16x32xf32>, vector<32x32xf32> -> vector<32x32xf32>
    %c0_4 = arith.constant 0 : index
    %c0_5 = arith.constant 0 : index
    %6 = vector.load %arg4[%c0_4, %c0_5] : memref<16x256xf32, #tpu.memory_space<vmem>>, vector<16x256xf32>
    %cst_6 = arith.constant dense<0.000000e+00> : vector<32x256xf32>
    %7 = tpu.matmul %3, %6, %cst_6 {dimension_numbers = #tpu.dot_dimension_numbers<[1], [0], [0], [1], [0, 0, 1, 1], [], []>} : vector<32x16xf32>, vector<16x256xf32>, vector<32x256xf32> -> vector<32x256xf32>
    %c0_7 = arith.constant 0 : index
    %c0_8 = arith.constant 0 : index
    %8 = vector.load %arg5[%c0_7, %c0_8] : memref<1x256xf32, #tpu.memory_space<vmem>>, vector<1x256xf32>
    %9 = vector.broadcast %8 : vector<1x256xf32> to vector<32x256xf32>
    %10 = arith.addf %7, %9 : vector<32x256xf32>
    %11 = vector.extract_strided_slice %10 {offsets = [0, 0], sizes = [32, 128], strides = [1, 1]} : vector<32x256xf32> to vector<32x128xf32>
    %cst_9 = arith.constant 0.000000e+00 : f32
    %12 = vector.broadcast %cst_9 : f32 to vector<32x128xf32>
    %13 = arith.cmpf oge, %11, %12 : vector<32x128xf32>
    %cst_10 = arith.constant 6.250000e-02 : f32
    %14 = vector.broadcast %cst_10 : f32 to vector<32x128xf32>
    %15 = arith.mulf %11, %14 : vector<32x128xf32>
    %16 = arith.select %13, %11, %15 : vector<32x128xi1>, vector<32x128xf32>
    %17 = vector.extract_strided_slice %10 {offsets = [0, 128], sizes = [32, 128], strides = [1, 1]} : vector<32x256xf32> to vector<32x128xf32>
    %c0_11 = arith.constant 0 : index
    %c0_12 = arith.constant 0 : index
    %18 = vector.load %arg3[%c0_11, %c0_12] : memref<32x32xf32, #tpu.memory_space<vmem>>, vector<32x32xf32>
    %c0_13 = arith.constant 0 : index
    %c0_14 = arith.constant 0 : index
    %19 = vector.load %arg11[%c0_13, %c0_14] : memref<8x32xf32, #tpu.memory_space<vmem>>, vector<8x32xf32>
    %20 = vector.extract_strided_slice %5 {offsets = [0, 0], sizes = [8, 32], strides = [1, 1]} : vector<32x32xf32> to vector<8x32xf32>
    %cst_15 = arith.constant dense<0.000000e+00> : vector<8x32xf32>
    %21 = tpu.matmul %19, %18, %cst_15 {dimension_numbers = #tpu.dot_dimension_numbers<[1], [0], [0], [1], [0, 0, 1, 1], [], []>} : vector<8x32xf32>, vector<32x32xf32>, vector<8x32xf32> -> vector<8x32xf32>
    %22 = arith.addf %21, %20 : vector<8x32xf32>
    %23 = math.tanh %22 : vector<8x32xf32>
    %24 = vector.extract_strided_slice %5 {offsets = [8, 0], sizes = [8, 32], strides = [1, 1]} : vector<32x32xf32> to vector<8x32xf32>
    %cst_16 = arith.constant dense<0.000000e+00> : vector<8x32xf32>
    %25 = tpu.matmul %23, %18, %cst_16 {dimension_numbers = #tpu.dot_dimension_numbers<[1], [0], [0], [1], [0, 0, 1, 1], [], []>} : vector<8x32xf32>, vector<32x32xf32>, vector<8x32xf32> -> vector<8x32xf32>
    %26 = arith.addf %25, %24 : vector<8x32xf32>
    %27 = math.tanh %26 : vector<8x32xf32>
    %28 = vector.extract_strided_slice %5 {offsets = [16, 0], sizes = [8, 32], strides = [1, 1]} : vector<32x32xf32> to vector<8x32xf32>
    %cst_17 = arith.constant dense<0.000000e+00> : vector<8x32xf32>
    %29 = tpu.matmul %27, %18, %cst_17 {dimension_numbers = #tpu.dot_dimension_numbers<[1], [0], [0], [1], [0, 0, 1, 1], [], []>} : vector<8x32xf32>, vector<32x32xf32>, vector<8x32xf32> -> vector<8x32xf32>
    %30 = arith.addf %29, %28 : vector<8x32xf32>
    %31 = math.tanh %30 : vector<8x32xf32>
    %32 = vector.extract_strided_slice %5 {offsets = [24, 0], sizes = [8, 32], strides = [1, 1]} : vector<32x32xf32> to vector<8x32xf32>
    %cst_18 = arith.constant dense<0.000000e+00> : vector<8x32xf32>
    %33 = tpu.matmul %31, %18, %cst_18 {dimension_numbers = #tpu.dot_dimension_numbers<[1], [0], [0], [1], [0, 0, 1, 1], [], []>} : vector<8x32xf32>, vector<32x32xf32>, vector<8x32xf32> -> vector<8x32xf32>
    %34 = arith.addf %33, %32 : vector<8x32xf32>
    %35 = math.tanh %34 : vector<8x32xf32>
    %c0_19 = arith.constant 0 : index
    %c0_20 = arith.constant 0 : index
    %36 = vector.load %arg11[%c0_19, %c0_20] : memref<8x32xf32, #tpu.memory_space<vmem>>, vector<8x32xf32>
    tpu.vector_store %arg11[%c0_19, %c0_20], %35 {strides = array<i32>} : memref<8x32xf32, #tpu.memory_space<vmem>>, vector<8x32xf32>,
    %37 = tpu.concatenate %23, %27, %31, %35 in 0 : vector<8x32xf32>, vector<8x32xf32>, vector<8x32xf32>, vector<8x32xf32> -> vector<32x32xf32>
    %c0_21 = arith.constant 0 : index
    %c0_22 = arith.constant 0 : index
    %38 = vector.load %arg6[%c0_21, %c0_22] : memref<32x128xf32, #tpu.memory_space<vmem>>, vector<32x128xf32>
    %cst_23 = arith.constant dense<0.000000e+00> : vector<32x128xf32>
    %39 = tpu.matmul %37, %38, %cst_23 {dimension_numbers = #tpu.dot_dimension_numbers<[1], [0], [0], [1], [0, 0, 1, 1], [], []>} : vector<32x32xf32>, vector<32x128xf32>, vector<32x128xf32> -> vector<32x128xf32>
    %c0_24 = arith.constant 0 : index
    %c0_25 = arith.constant 0 : index
    %40 = vector.load %arg7[%c0_24, %c0_25] : memref<1x128xf32, #tpu.memory_space<vmem>>, vector<1x128xf32>
    %41 = vector.broadcast %40 : vector<1x128xf32> to vector<32x128xf32>
    %42 = arith.addf %39, %41 : vector<32x128xf32>
    %c0_26 = arith.constant 0 : index
    %c0_27 = arith.constant 0 : index
    %43 = vector.load %arg8[%c0_26, %c0_27] : memref<128x128xf32, #tpu.memory_space<vmem>>, vector<128x128xf32>
    %cst_28 = arith.constant dense<0.000000e+00> : vector<32x128xf32>
    %44 = tpu.matmul %16, %43, %cst_28 {dimension_numbers = #tpu.dot_dimension_numbers<[1], [0], [0], [1], [0, 0, 1, 1], [], []>} : vector<32x128xf32>, vector<128x128xf32>, vector<32x128xf32> -> vector<32x128xf32>
    %c0_29 = arith.constant 0 : index
    %c0_30 = arith.constant 0 : index
    %45 = vector.load %arg9[%c0_29, %c0_30] : memref<1x128xf32, #tpu.memory_space<vmem>>, vector<1x128xf32>
    %46 = vector.broadcast %45 : vector<1x128xf32> to vector<32x128xf32>
    %47 = arith.addf %44, %46 : vector<32x128xf32>
    %cst_31 = arith.constant 0.000000e+00 : f32
    %48 = vector.broadcast %cst_31 : f32 to vector<32x128xf32>
    %49 = arith.cmpf oge, %47, %48 : vector<32x128xf32>
    %cst_32 = arith.constant 6.250000e-02 : f32
    %50 = vector.broadcast %cst_32 : f32 to vector<32x128xf32>
    %51 = arith.mulf %47, %50 : vector<32x128xf32>
    %52 = arith.select %49, %47, %51 : vector<32x128xi1>, vector<32x128xf32>
    %cst_33 = arith.constant 0.000000e+00 : f32
    %53 = vector.broadcast %cst_33 : f32 to vector<32x128xf32>
    %54 = arith.cmpf oge, %42, %53 : vector<32x128xf32>
    %cst_34 = arith.constant 6.250000e-02 : f32
    %55 = vector.broadcast %cst_34 : f32 to vector<32x128xf32>
    %56 = arith.mulf %42, %55 : vector<32x128xf32>
    %57 = arith.select %54, %42, %56 : vector<32x128xi1>, vector<32x128xf32>
    %cst_35 = arith.constant 0.000000e+00 : f32
    %58 = vector.broadcast %cst_35 : f32 to vector<32x128xf32>
    %59 = arith.cmpf oge, %17, %58 : vector<32x128xf32>
    %cst_36 = arith.constant 6.250000e-02 : f32
    %60 = vector.broadcast %cst_36 : f32 to vector<32x128xf32>
    %61 = arith.mulf %17, %60 : vector<32x128xf32>
    %62 = arith.select %59, %17, %61 : vector<32x128xi1>, vector<32x128xf32>
    %63 = arith.addf %57, %62 : vector<32x128xf32>
    %64 = arith.addf %63, %52 : vector<32x128xf32>
    %cst_37 = arith.constant 0.000000e+00 : f32
    %65 = vector.broadcast %cst_37 : f32 to vector<32x128xf32>
    %66 = arith.maximumf %64, %65 : vector<32x128xf32>
    %67 = vector.shape_cast %66 : vector<32x128xf32> to vector<4x8x128xf32>
    %cst_38 = arith.constant dense<0.000000e+00> : vector<8x128xf32>
    %68 = vector.multi_reduction <add>, %67, %cst_38 [0] : vector<4x8x128xf32> to vector<8x128xf32>
    %c0_39 = arith.constant 0 : index
    %c0_40 = arith.constant 0 : index
    %69 = vector.load %arg10[%c0_39, %c0_40] : memref<8x128xf32, #tpu.memory_space<vmem>>, vector<8x128xf32>
    %cst_41 = arith.constant 1.250000e-01 : f32
    %70 = vector.broadcast %cst_41 : f32 to vector<8x128xf32>
    %71 = arith.mulf %68, %70 : vector<8x128xf32>
    %72 = arith.addf %69, %71 : vector<8x128xf32>
    %c0_42 = arith.constant 0 : index
    %c0_43 = arith.constant 0 : index
    %73 = vector.load %arg10[%c0_42, %c0_43] : memref<8x128xf32, #tpu.memory_space<vmem>>, vector<8x128xf32>
    tpu.vector_store %arg10[%c0_42, %c0_43], %72 {strides = array<i32>} : memref<8x128xf32, #tpu.memory_space<vmem>>, vector<8x128xf32>,
    return
  }
  func.func @transform_0(%arg0: i32) -> (i32, i32) {
    %c0_i32 = arith.constant 0 : i32
    %c0_i32_0 = arith.constant 0 : i32
    return %arg0, %c0_i32 : i32, i32
  }
  func.func @transform_1(%arg0: i32) -> (i32, i32) {
    %c0_i32 = arith.constant 0 : i32
    %c0_i32_0 = arith.constant 0 : i32
    %c0_i32_1 = arith.constant 0 : i32
    return %c0_i32, %c0_i32_0 : i32, i32
  }
  func.func @transform_2(%arg0: i32) -> (i32, i32) {
    %c0_i32 = arith.constant 0 : i32
    %c0_i32_0 = arith.constant 0 : i32
    %c0_i32_1 = arith.constant 0 : i32
    return %c0_i32, %c0_i32_0 : i32, i32
  }
  func.func @transform_3(%arg0: i32) -> (i32, i32) {
    %c0_i32 = arith.constant 0 : i32
    %c0_i32_0 = arith.constant 0 : i32
    %c0_i32_1 = arith.constant 0 : i32
    return %c0_i32, %c0_i32_0 : i32, i32
  }
  func.func @transform_4(%arg0: i32) -> (i32, i32) {
    %c0_i32 = arith.constant 0 : i32
    %c0_i32_0 = arith.constant 0 : i32
    %c0_i32_1 = arith.constant 0 : i32
    return %c0_i32, %c0_i32_0 : i32, i32
  }
  func.func @transform_5(%arg0: i32) -> (i32, i32) {
    %c0_i32 = arith.constant 0 : i32
    %c0_i32_0 = arith.constant 0 : i32
    %c0_i32_1 = arith.constant 0 : i32
    return %c0_i32, %c0_i32_0 : i32, i32
  }
  func.func @transform_6(%arg0: i32) -> (i32, i32) {
    %c0_i32 = arith.constant 0 : i32
    %c0_i32_0 = arith.constant 0 : i32
    %c0_i32_1 = arith.constant 0 : i32
    return %c0_i32, %c0_i32_0 : i32, i32
  }
  func.func @transform_7(%arg0: i32) -> (i32, i32) {
    %c0_i32 = arith.constant 0 : i32
    %c0_i32_0 = arith.constant 0 : i32
    %c0_i32_1 = arith.constant 0 : i32
    return %c0_i32, %c0_i32_0 : i32, i32
  }
  func.func @transform_8(%arg0: i32) -> (i32, i32) {
    %c0_i32 = arith.constant 0 : i32
    %c0_i32_0 = arith.constant 0 : i32
    %c0_i32_1 = arith.constant 0 : i32
    return %c0_i32, %c0_i32_0 : i32, i32
  }
  func.func @transform_9(%arg0: i32) -> (i32, i32) {
    %c0_i32 = arith.constant 0 : i32
    %c0_i32_0 = arith.constant 0 : i32
    %c0_i32_1 = arith.constant 0 : i32
    return %c0_i32, %c0_i32_0 : i32, i32
  }
}

</mosaic_0001>

<bundles_post_ra>
// kernel: tpu_custom_call.1
= control target key start
LH: loop header
LB: loop body
LE: loop exit
PB: predicated region body
PF: predicated region fallthrough
CT: control target
= control target key end

     0   :  { %14 = vsyncpa [#allocation4], 0  ;;  %s1827_s0 = inlined_call_operand.vmem [shape: f32[64,16], index: 0, kind: input, shape index: {}]   ;;  %s1828_s1 = inlined_call_operand.vmem [shape: f32[16,32], index: 1, kind: input, shape index: {}]   ;;  %s1829_s2 = inlined_call_operand.vmem [shape: f32[32,32], index: 2, kind: input, shape index: {}]   ;;  %s1830_s3 = inlined_call_operand.vmem [shape: f32[16,256], index: 3, kind: input, shape index: {}]   ;;  %s1831_s4 = inlined_call_operand.vmem [shape: f32[1,256], index: 4, kind: input, shape index: {}]   ;;  %s1832_s5 = inlined_call_operand.hbm [shape: f32[32,128], index: 5, kind: input, shape index: {}]   ;;  %s1833_s6 = inlined_call_operand.vmem [shape: f32[1,128], index: 6, kind: input, shape index: {}]   ;;  %s1834_s7 = inlined_call_operand.hbm [shape: f32[128,128], index: 7, kind: input, shape index: {}]   ;;  %s1835_s8 = inlined_call_operand.vmem [shape: f32[1,128], index: 8, kind: input, shape index: {}]   ;;  %s1836_s9 = inlined_call_operand.hbm [shape: f32[8,128], index: 9, kind: output, shape index: {}]  }
   0x1   :  { %15 = vsyncpa [#allocation7], 0 }
   0x2   :  { %16 = vsyncpa [#allocation5], 0  ;;  %s1608_s30 = smov 0  }
   0x3 LB: > { %s1614_s10 = sadd.s32 4294967295, %s1548_s30   ;;  %p1213_p0 = scmp.ge.s32.totalorder %s1548_s30, 1  ;;  %s1548_s30 = sphi %s1608_s30, %s22_s30  }
   0x4   : > { %p242_p1 = scmp.lt.s32.totalorder %s1548_s30, 3  ;;  %s1550_s11 = smov [#allocation3]  }
   0x5   : > { %s266_s12 = sshll.u32 %s1550_s11, 4  ;;  %p1424_p4 = scmp.eq.s32.totalorder %s1614_s10, 0  ;;  %s267_s12 = int_to_ptr.vmem [resolvable:$true] %s266_s12 }
   0x6   : > { %p1619_p3 = pnand %p1213_p0, %p242_p1  ;;  %s1551_s14 = smov [#allocation6]  }
   0x7   : > { %s282_s15 = sshll.u32 %s1551_s14, 4  ;;  %s1465_s17 = scalar_lea.vmem %s267_s12, 512  ;;  %s283_s15 = int_to_ptr.vmem [resolvable:$true] %s282_s15 }
   0x8   : > { %p1417_p5 = pneg %p1619_p3  ;;  %p1466_p8 = scmp.ne.s32.totalorder %s267_s12, %s1465_s17 }
   0x9   : > { %p1473_p11 = scmp.lt.s32.totalorder %s267_s12, %s267_s12  ;;  %p1474_p12 = scmp.lt.s32.totalorder %s1465_s17, %s1465_s17 }
   0xa   : > { %p1628_p6 = pnand %p1424_p4, %p1417_p5 }
   0xb   : > { %p1475_p13 = por %p1474_p12, %p1473_p11 }
   0xc   : > { %p1456_p7 = pneg %p1628_p6 }
   0xe   : > { %p1468_p9 = pnand %p1466_p8, %p1456_p7 }
  0x10   : > { %p1469_p10 = pneg %p1468_p9 }
  0x12   : > { %p1476_p0 = pnand %p1475_p13, %p1469_p10 }
  0x14   : > { %1479 = shalt.err (!%p1476_p0)
}
  0x15   : > { %s1552_s18 = smov 128   ;;  %s1553_s19 = smov 8  }
  0x16   : > { %1420 = dma.hbm_to_vmem [thread:$0]  (!%p1628_p6), %s1832_s5, 512, %s267_s12, [#allocation4], %s1552_s18, %s1552_s18, %s1553_s19  }
  0x17   : > { %s1491_s22 = scalar_lea.vmem %s283_s15, 2048  ;;  %p1499_p9 = scmp.lt.s32.totalorder %s283_s15, %s283_s15 }
  0x18   : > { %p1492_p1 = scmp.ne.s32.totalorder %s283_s15, %s1491_s22  ;;  %p1500_p2 = scmp.lt.s32.totalorder %s1491_s22, %s1491_s22 }
  0x1a   : > { %p1494_p5 = pnand %p1492_p1, %p1456_p7  ;;  %p1501_p11 = por %p1500_p2, %p1499_p9 }
  0x1c   : > { %p1495_p8 = pneg %p1494_p5 }
  0x1e   : > { %p1502_p10 = pnand %p1501_p11, %p1495_p8 }
  0x20   : > { %1505 = shalt.err (!%p1502_p10)
}
  0x21   : > { %1423 = dma.hbm_to_vmem [thread:$0]  (!%p1628_p6), %s1834_s7, 2048, %s283_s15, [#allocation7], %s1552_s18, %s1552_s18, %s1553_s19  }
  0x22   : > { %310 = sbr.rel (%p1619_p3) target bundleno = 1127 (0x467), region = 56 }
  0x27   : > { %1535 = dma.done.wait (%p1424_p4), [#allocation4], 512  }
  0x28   : > { %1537 = vsyncadd (%p1424_p4), [#allocation4], 4294966784 }
  0x29   : > { %1539 = dma.done.wait (%p1424_p4), [#allocation7], 2048  }
  0x2a   : > { %1541 = vsyncadd (%p1424_p4), [#allocation7], 4294965248  ;;  %s1220_s25 = sshll.u32 %s1614_s10, 2  ;;  %p1839_p3 = scmp.ne.s32.totalorder %s1614_s10, 0 }
  0x2b   : > { %p346_p2 = scmp.lt.s32.totalorder %s1220_s25, 7 }
  0x2c   : > { %354 = sbr.rel (%p1839_p3) target bundleno = 51 (0x33), region = 68 }
  0x2d   : > { %s1841_s25 = smov (!%p346_p2, %s1220_s25), 7 }
  0x2e   : > { %s1221_s26 = sshll.u32 %s1841_s25, 3 }
  0x2f   : > { %s1664_s29 = scalar_lea.vmem %s1827_s0, %s1221_s26 }
  0x31   : > { %vm355_vm0 = vcmask 261120   ;;  %v1554_v0 = vmov 0.0  }
  0x32   : > { %356 = vst.msk [vmem:[#allocation2] sm:$0xff] %vm355_vm0, %v1554_v0  ;;  %357 = vst [vmem:[#allocation8] sm:$0xff] %v1554_v0 }
  0x33 PF: > { %v465_v1 = vld [vmem:[%s1830_s3 + $0x18] sm:$0xff]  ;;  %v464_v2 = vld [vmem:[%s1830_s3 + $0x10] sm:$0xff]  ;;  %v463_v3 = vld [vmem:[%s1830_s3 + $0x8] sm:$0xff]  ;;  %v1555_v5 = vmov 0.0   ;;  %vm364_vm1 = vcmask 130048   ;;  %vm1556_vm2 = vmmov 0   ;;  %v468_v17 = vlaneseq }
  0x34   : > { %506 = vmatprep.subr.mxu1 %v465_v1  ;;  %v462_v4 = vld [vmem:[%s1830_s3] sm:$0xff]  ;;  %542 = vmatprep.mubr.f32.mxu1 %v1555_v5  ;;  %v1686_v7 = vld [vmem:[%s1829_s2 + $0x18] sm:$0xff]  ;;  %v363_v8 = vld [vmem:[%s1828_s1 + $0x8] sm:$0xff]  ;;  %vm584_vm3 = vcmask 261120   ;;  %s1557_s18 = smov [#allocation8]   ;;  %p1428_p4 = scmp.eq.s32.totalorder %s1614_s10, 1 }
  0x35   : > { %v358_v6 = vld [vmem:[%s1664_s29] sm:$0xff]  ;;  %507 = vmatpush1.msra.mxu1 %v464_v2  ;;  %1299 = vmatprep.subr.mxu0 %v363_v8  ;;  %v1696_v9 = vld [vmem:[%s1829_s2 + $0x10] sm:$0xff]  ;;  %v359_v11 = vld [vmem:[%s1664_s29 + $0x8] sm:$0xff]  ;;  %v469_v18 = vshrl.u32 %v468_v17, 7  ;;  %s1151_s19 = sshll.u32 %s1557_s18, 4  ;;  %s1152_s19 = int_to_ptr.vmem [resolvable:$true] %s1151_s19 }
  0x36   : > { %1303 = vmatprep.mubr.msk.f32.mxu0 %vm364_vm1, %v358_v6  ;;  %508 = vmatprep.subr.mxu1 %v463_v3  ;;  %v362_v10 = vld [vmem:[%s1828_s1] sm:$0xff]  ;;  %v1708_v12 = vld [vmem:[%s1829_s2 + $0x8] sm:$0xff]  ;;  %v360_v14 = vld [vmem:[%s1664_s29 + $0x10] sm:$0xff]  ;;  %s1506_s20 = scalar_lea.vmem %s1152_s19, 128  ;;  %p1513_p13 = scmp.lt.s32.totalorder %s1152_s19, %s1152_s19 }
  0x37   : > { %509 = vmatpush1.msra.mxu1 %v462_v4  ;;  %1300 = vmatpush3.msra.mxu0 %v363_v8  ;;  %v1716_v13 = vld [vmem:[%s1829_s2] sm:$0xff]  ;;  %v361_v15 = vld [vmem:[%s1664_s29 + $0x18] sm:$0xff]  ;;  %v474_v19 = vsub.s32 1, %v469_v18  ;;  %v883_v46 = vld [vmem:[#allocation3 + $0x8] sm:$0xff]  ;;  %v470_v52 = vsub.s32 0, %v469_v18  ;;  %p1507_p6 = scmp.ne.s32.totalorder %s1152_s19, %s1506_s20  ;;  %p1514_p0 = scmp.lt.s32.totalorder %s1506_s20, %s1506_s20 }
  0x38   : > { %1227 = vmatmul.mubr.msk.f32.vlgmr.msra.gmra.mxu1 %vm364_vm1, %v358_v6  ;;  %1309 = vmatprep.subr.mxu1 %v1555_v5  ;;  %v466_v20 = vld [vmem:[%s1831_s4] sm:$0x3]  ;;  %v884_v45 = vld [vmem:[#allocation3 + $0x10] sm:$0xff]  ;;  %v882_v47 = vld [vmem:[#allocation3] sm:$0xff] }
  0x39   : > { %1310 = vmatpush3.msra.mxu1 %v1686_v7  ;;  %548 = vmatprep.mubr.f32.mxu1 %v1555_v5  ;;  %v583_v16 = vld [vmem:[#allocation2] sm:$0xff]  ;;  %v475_v21 = vrot.slane %v466_v20, %v474_v19  ;;  %v471_v55 = vrot.slane %v466_v20, %v470_v52  ;;  %v995_v59 = vld [vmem:[#allocation6 + $0x70] sm:$0xff]  ;;  %v994_v61 = vld [vmem:[#allocation6 + $0x68] sm:$0xff]  ;;  %p1508_p7 = pnand %p1507_p6, %p1428_p4  ;;  %p1515_p1 = por %p1514_p0, %p1513_p13 }
  0x3a   : > { %1311 = vmatprep.subr.mxu1 %v1555_v5  ;;  %1301 = vmatprep.subr.mxu0 %v362_v10  ;;  %v885_v40 = vld [vmem:[#allocation3 + $0x18] sm:$0xff]  ;;  %v993_v62 = vld [vmem:[#allocation6 + $0x60] sm:$0xff]  ;;  %v991_v0 = vld [vmem:[#allocation6 + $0x50] sm:$0xff] }
  0x3b   : > { %1312 = vmatpush3.msra.mxu1 %v1696_v9  ;;  %1302 = vmatpush3.msra.mxu0 %v362_v10  ;;  %v996_v48 = vld [vmem:[#allocation6 + $0x78] sm:$0xff]  ;;  %v990_v1 = vld [vmem:[#allocation6 + $0x48] sm:$0xff]  ;;  %v989_v2 = vld [vmem:[#allocation6 + $0x40] sm:$0xff]  ;;  %p1509_p12 = pneg %p1508_p7 }
  0x3c   : > { %1228 = vmatmul.mubr.msk.f32.gmra.mxu1 %vm364_vm1, %v359_v11  ;;  %1313 = vmatprep.subr.mxu1 %v1555_v5  ;;  %v992_v63 = vld [vmem:[#allocation6 + $0x58] sm:$0xff]  ;;  %v987_v4 = vld [vmem:[#allocation6 + $0x30] sm:$0xff]  ;;  %v985_v6 = vld [vmem:[#allocation6 + $0x20] sm:$0xff] }
  0x3d   : > { %554 = vmatprep.mubr.f32.mxu1 %v1555_v5  ;;  %1314 = vmatpush3.msra.mxu1 %v1708_v12  ;;  %v988_v3 = vld [vmem:[#allocation6 + $0x38] sm:$0xff]  ;;  %p1516_p5 = pnand %p1515_p1, %p1509_p12 }
  0x3e   : > { %1315 = vmatprep.subr.mxu1 %v1555_v5  ;;  %1304 = vmatmul.mubr.msk.f32.vlgmr.msra.gmra.mxu0 %vm364_vm1, %v359_v11  ;;  %v982_v11 = vld [vmem:[#allocation6 + $0x8] sm:$0xff] }
  0x3f   : > { %1316 = vmatpush3.msra.mxu1 %v1716_v13  ;;  %1306 = vmatprep.mubr.msk.f32.mxu0 %vm364_vm1, %v360_v14 }
  0x40   : > { %1229 = vmatmul.mubr.msk.f32.gmra.mxu1 %vm364_vm1, %v360_v14  ;;  %1320 = vmatprep.subr.mxu1 %v1555_v5  ;;  %v981_v14 = vld [vmem:[#allocation6] sm:$0xff] }
  0x41   : > { %560 = vmatprep.mubr.f32.mxu1 %v1555_v5  ;;  %1342 = vmatprep.subr.mxu0 %v1555_v5 }
  0x42   : > { %1307 = vmatmul.mubr.msk.f32.gmra.mxu0 %vm364_vm1, %v361_v15 }
  0x43   : > { %1343 = vmatpush3.msra.mxu0 %v1686_v7  ;;  %1350 = vmatprep.mubr.msk.f32.mxu0 %vm1556_vm2, %v1555_v5 }
  0x44   : > { %1230 = vmatmul.mubr.msk.f32.gmra.mxu1 %vm364_vm1, %v361_v15  ;;  %1344 = vmatprep.subr.mxu0 %v1555_v5 }
  0x45   : > { %1317 = vmatprep.mubr.msk.f32.mxu1 %vm1556_vm2, %v1555_v5  ;;  %1345 = vmatpush3.msra.mxu0 %v1696_v9 }
  0x46   : > { %1346 = vmatprep.subr.mxu0 %v1555_v5 }
  0x47   : > { %1347 = vmatpush3.msra.mxu0 %v1708_v12 }
  0x48   : > { %1318 = vmatmul.mubr.msk.f32.vlgmr.msra.gmra.mxu1 %vm584_vm3, %v583_v16  ;;  %1348 = vmatprep.subr.mxu0 %v1555_v5 }
  0x49   : > { %1321 = vmatpush3.msra.mxu1 %v1686_v7  ;;  %1328 = vmatprep.mubr.msk.f32.mxu1 %vm1556_vm2, %v1555_v5 }
  0x4a   : > { %1322 = vmatprep.subr.mxu1 %v1555_v5  ;;  %1349 = vmatpush3.msra.mxu0 %v1716_v13 }
  0x4b   : > { %1323 = vmatpush3.msra.mxu1 %v1696_v9  ;;  %1367 = vmatprep.subr.mxu0 %v996_v48 }
  0x4c   : > { %1324 = vmatprep.subr.mxu1 %v1555_v5 }
  0x4d   : > { %1325 = vmatpush3.msra.mxu1 %v1708_v12 }
  0x4e   : > { %1326 = vmatprep.subr.mxu1 %v1555_v5 }
  0x4f   : > { %1327 = vmatpush3.msra.mxu1 %v1716_v13 }
  0x50   : > { %1331 = vmatprep.subr.mxu1 %v1555_v5 }
  0xf8   : > { %v544_v22 = vpop.f32.mrf.mxu1 }
  0xf9   : > { %v545_v56 = vadd.f32 %v544_v22, %v471_v55 }
  0xfa   : > { %v546_v23 = vpop.f32.mrf.mxu1 }
  0xfb   : > { %v1757_v24 = vadd.f32 %v546_v23, %v475_v21  ;;  %v571_v57 = vmul.f32 0.0625, %v545_v56  ;;  %vm567_vm4 = vcmp.ge.f32.partialorder %v545_v56, 0.0 }
  0xfc   : > { %v1759_v25 = vpop.f32.mrf.mxu1 }
  0xfd   : > { %v575_v60 = vsel %vm567_vm4, %v545_v56, %v571_v57  ;;  %v551_v8 = vadd.f32 %v1759_v25, %v471_v55  ;;  %vm1113_vm11 = vcmp.ge.f32.partialorder %v1757_v24, 0.0 }
  0xfe   : > { %v552_v26 = vpop.f32.mrf.mxu1  ;;  %v1305_v32 = vpop.f32.mrf.mxu0 }
  0xff   : > { %v1761_v27 = vadd.f32 %v552_v26, %v475_v21  ;;  %vm568_vm5 = vcmp.ge.f32.partialorder %v551_v8, 0.0  ;;  %v1235_v26 = vld [vmem:[%s1833_s6] ss:$0 sm:$0xff] }
 0x100   : > { %v1763_v28 = vpop.f32.mrf.mxu1  ;;  %v443_v35 = vpop.f32.mrf.mxu0 }
 0x101   : > { %v557_v10 = vadd.f32 %v1763_v28, %v471_v55  ;;  %vm1114_vm9 = vcmp.ge.f32.partialorder %v1761_v27, 0.0 }
 0x102   : > { %v558_v29 = vpop.f32.mrf.mxu1  ;;  %v1784_v49 = vpop.f32.mrf.mxu0 }
 0x103   : > { %v1765_v30 = vadd.f32 %v558_v29, %v475_v21  ;;  %v573_v15 = vmul.f32 0.0625, %v557_v10  ;;  %vm569_vm6 = vcmp.ge.f32.partialorder %v557_v10, 0.0 }
 0x104   : > { %v1767_v31 = vpop.f32.mrf.mxu1  ;;  %v453_v50 = vpop.f32.mrf.mxu0 }
 0x105   : > { %v577_v18 = vsel %vm569_vm6, %v557_v10, %v573_v15  ;;  %vm1115_vm0 = vcmp.ge.f32.partialorder %v1765_v30, 0.0 }
 0x106   : > { %v564_v33 = vpop.f32.mrf.mxu1 }
 0x107   : > { %v1769_v34 = vadd.f32 %v564_v33, %v475_v21  ;;  %v1118_v33 = vmul.f32 0.0625, %v1761_v27 }
 0x108   : > { %v654_v36 = vpop.f32.mrf.mxu1 }
 0x109   : > { %v655_v37 = vadd.f32 %v654_v36, %v443_v35  ;;  %v1240_v35 = vld [vmem:[%s1835_s8] ss:$0 sm:$0xff]  ;;  %vm1116_vm14 = vcmp.ge.f32.partialorder %v1769_v34, 0.0 }
 0x10a   : > { %v1319_v38 = vpop.f32.mrf.mxu1 }
 0x10b   : > { %1446 = vtanh.f32 %v655_v37  ;;  %v1117_v38 = vmul.f32 0.0625, %v1757_v24 }
 0x118   : > { %v1447_v39 = vpop.eup %1446 }
 0x119   : > { %1329 = vmatmul.mubr.msk.f32.vlgmr.msra.gmra.mxu1 %vm584_vm3, %v1447_v39 }
 0x11a   : > { %1332 = vmatpush3.msra.mxu1 %v1686_v7  ;;  %1339 = vmatprep.mubr.msk.f32.mxu1 %vm1556_vm2, %v1555_v5  ;;  %v984_v7 = vld [vmem:[#allocation6 + $0x18] sm:$0xff] }
 0x11b   : > { %1333 = vmatprep.subr.mxu1 %v1555_v5 }
 0x11c   : > { %1334 = vmatpush3.msra.mxu1 %v1696_v9  ;;  %v983_v9 = vld [vmem:[#allocation6 + $0x10] sm:$0xff] }
 0x11d   : > { %1335 = vmatprep.subr.mxu1 %v1555_v5 }
 0x11e   : > { %1336 = vmatpush3.msra.mxu1 %v1708_v12  ;;  %v572_v12 = vmul.f32 0.0625, %v551_v8 }
 0x11f   : > { %1337 = vmatprep.subr.mxu1 %v1555_v5  ;;  %v986_v5 = vld [vmem:[#allocation6 + $0x28] sm:$0xff] }
 0x120   : > { %1338 = vmatpush3.msra.mxu1 %v1716_v13  ;;  %v563_v13 = vadd.f32 %v1767_v31, %v471_v55  ;;  %v576_v17 = vsel %vm568_vm5, %v551_v8, %v572_v12 }
 0x121   : > { %1353 = vmatprep.subr.mxu1 %v885_v40 }
 0x122   : > { %v574_v16 = vmul.f32 0.0625, %v563_v13  ;;  %vm570_vm7 = vcmp.ge.f32.partialorder %v563_v13, 0.0 }
 0x124   : > { %v578_v19 = vsel %vm570_vm7, %v563_v13, %v574_v16 }
 0x1d9   : > { %v728_v41 = vpop.f32.mrf.mxu1 }
 0x1da   : > { %v729_v42 = vadd.f32 %v1305_v32, %v728_v41  ;;  %v1122_v41 = vsel %vm1114_vm9, %v1761_v27, %v1118_v33 }
 0x1db   : > { %v1330_v43 = vpop.f32.mrf.mxu1 }
 0x1dc   : > { %1448 = vtanh.f32 %v729_v42 }
 0x1e9   : > { %v1449_v44 = vpop.eup %1448 }
 0x1ea   : > { %1340 = vmatmul.mubr.msk.f32.vlgmr.msra.gmra.mxu1 %vm584_vm3, %v1449_v44 }
 0x1eb   : > { %1354 = vmatpush3.msra.mxu1 %v885_v40  ;;  %1361 = vmatprep.mubr.msk.f32.mxu1 %vm584_vm3, %v1447_v39 }
 0x1ec   : > { %1355 = vmatprep.subr.mxu1 %v884_v45 }
 0x1ed   : > { %1356 = vmatpush3.msra.mxu1 %v884_v45 }
 0x1ee   : > { %1357 = vmatprep.subr.mxu1 %v883_v46 }
 0x1ef   : > { %1358 = vmatpush3.msra.mxu1 %v883_v46 }
 0x1f0   : > { %1359 = vmatprep.subr.mxu1 %v882_v47 }
 0x1f1   : > { %1360 = vmatpush3.msra.mxu1 %v882_v47  ;;  %v1121_v47 = vsel %vm1113_vm11, %v1757_v24, %v1117_v38 }
 0x1f2   : > { %1362 = vmatmul.mubr.msk.f32.vlgmr.msra.gmra.mxu1 %vm584_vm3, %v1449_v44 }
 0x2aa   : > { %v802_v51 = vpop.f32.mrf.mxu1 }
 0x2ab   : > { %v803_v53 = vadd.f32 %v802_v51, %v453_v50 }
 0x2ac   : > { %v1341_v54 = vpop.f32.mrf.mxu1 }
 0x2ad   : > { %1450 = vtanh.f32 %v803_v53 }
 0x2b2   : > { %v1363_v25 = vpop.f32.mrf.mxu1 }
 0x2b3   : > { %v968_v29 = vadd.f32 %v1363_v25, %v1235_v26 }
 0x2b4   : > { %v962_v28 = vpop.f32.mrf.mxu1 }
 0x2b5   : > { %v963_v31 = vadd.f32 %v1235_v26, %v962_v28  ;;  %v1106_v32 = vmul.f32 0.0625, %v968_v29  ;;  %vm1102_vm8 = vcmp.ge.f32.partialorder %v968_v29, 0.0 }
 0x2b7   : > { %v1105_v36 = vmul.f32 0.0625, %v963_v31  ;;  %vm1101_vm10 = vcmp.ge.f32.partialorder %v963_v31, 0.0  ;;  %v1110_v39 = vsel %vm1102_vm8, %v968_v29, %v1106_v32 }
 0x2b8   : > { %v1126_v46 = vadd.f32 %v1122_v41, %v1110_v39 }
 0x2b9   : > { %v1109_v43 = vsel %vm1101_vm10, %v963_v31, %v1105_v36 }
 0x2ba   : > { %v1451_v58 = vpop.eup %1450  ;;  %v1125_v50 = vadd.f32 %v1121_v47, %v1109_v43 }
 0x2bb   : > { %1351 = vmatmul.mubr.msk.f32.vlgmr.msra.gmra.mxu0 %vm584_vm3, %v1451_v58  ;;  %1364 = vmatprep.mubr.msk.f32.mxu1 %vm584_vm3, %v1451_v58  ;;  %v1120_v58 = vmul.f32 0.0625, %v1769_v34 }
 0x2bc   : > { %1368 = vmatpush3.msra.mxu0 %v996_v48  ;;  %1399 = vmatprep.mubr.f32.mxu0 %v575_v60 }
 0x2bd   : > { %1369 = vmatprep.subr.mxu0 %v995_v59 }
 0x2be   : > { %1370 = vmatpush3.msra.mxu0 %v995_v59 }
 0x2bf   : > { %1371 = vmatprep.subr.mxu0 %v994_v61 }
 0x2c0   : > { %1372 = vmatpush3.msra.mxu0 %v994_v61 }
 0x2c1   : > { %1373 = vmatprep.subr.mxu0 %v993_v62 }
 0x2c2   : > { %1374 = vmatpush3.msra.mxu0 %v993_v62 }
 0x2c3   : > { %1375 = vmatprep.subr.mxu0 %v992_v63 }
 0x2c4   : > { %1376 = vmatpush3.msra.mxu0 %v992_v63  ;;  %v1119_v63 = vmul.f32 0.0625, %v1765_v30 }
 0x2c5   : > { %1377 = vmatprep.subr.mxu0 %v991_v0 }
 0x2c6   : > { %1378 = vmatpush3.msra.mxu0 %v991_v0  ;;  %v1123_v8 = vsel %vm1115_vm0, %v1765_v30, %v1119_v63 }
 0x2c7   : > { %1379 = vmatprep.subr.mxu0 %v990_v1 }
 0x2c8   : > { %1380 = vmatpush3.msra.mxu0 %v990_v1 }
 0x2c9   : > { %1381 = vmatprep.subr.mxu0 %v989_v2 }
 0x2ca   : > { %1382 = vmatpush3.msra.mxu0 %v989_v2  ;;  %v1124_v2 = vsel %vm1116_vm14, %v1769_v34, %v1120_v58 }
 0x2cb   : > { %1383 = vmatprep.subr.mxu0 %v988_v3 }
 0x2cc   : > { %1384 = vmatpush3.msra.mxu0 %v988_v3 }
 0x2cd   : > { %1385 = vmatprep.subr.mxu0 %v987_v4 }
 0x2ce   : > { %1386 = vmatpush3.msra.mxu0 %v987_v4 }
 0x2cf   : > { %1387 = vmatprep.subr.mxu0 %v986_v5 }
 0x2d0   : > { %1388 = vmatpush3.msra.mxu0 %v986_v5 }
 0x2d1   : > { %1389 = vmatprep.subr.mxu0 %v985_v6 }
 0x2d2   : > { %1390 = vmatpush3.msra.mxu0 %v985_v6 }
 0x2d3   : > { %1391 = vmatprep.subr.mxu0 %v984_v7 }
 0x2d4   : > { %1392 = vmatpush3.msra.mxu0 %v984_v7 }
 0x2d5   : > { %1393 = vmatprep.subr.mxu0 %v983_v9 }
 0x2d6   : > { %1394 = vmatpush3.msra.mxu0 %v983_v9 }
 0x2d7   : > { %1395 = vmatprep.subr.mxu0 %v982_v11 }
 0x2d8   : > { %1396 = vmatpush3.msra.mxu0 %v982_v11 }
 0x2d9   : > { %1397 = vmatprep.subr.mxu0 %v981_v14 }
 0x2da   : > { %1398 = vmatpush3.msra.mxu0 %v981_v14 }
 0x2db   : > { %1400 = vmatmul.mubr.f32.vlgmr.msra.gmra.mxu0 %v576_v17 }
 0x2dc   : > { %1402 = vmatprep.mubr.f32.mxu0 %v577_v18  ;;  %v1140_v18 = vld [vmem:[#allocation8] sm:$0xff] }
 0x2df   : > { %1403 = vmatmul.mubr.f32.gmra.mxu0 %v578_v19 }
 0x37b   : > { %v876_v20 = vpop.f32.mrf.mxu0 }
 0x37c   : > { %v877_v21 = vadd.f32 %v1784_v49, %v876_v20 }
 0x37d   : > { %v1352_v22 = vpop.f32.mrf.mxu0 }
 0x37e   : > { %1452 = vtanh.f32 %v877_v21 }
 0x38b   : > { %v1453_v23 = vpop.eup %1452 }
 0x38c   : > { %881 = vst.msk [vmem:[#allocation2] sm:$0xff] %vm584_vm3, %v1453_v23  ;;  %1365 = vmatmul.mubr.msk.f32.gmra.mxu1 %vm584_vm3, %v1453_v23 }
 0x39b   : > { %v1401_v37 = vpop.f32.mrf.mxu0 }
 0x39c   : > { %v1076_v40 = vadd.f32 %v1401_v37, %v1240_v35 }
 0x39d   : > { %v1070_v42 = vpop.f32.mrf.mxu0 }
 0x39e   : > { %vm1090_vm12 = vcmp.ge.f32.partialorder %v1076_v40, 0.0  ;;  %v1094_v44 = vmul.f32 0.0625, %v1076_v40  ;;  %v1071_v45 = vadd.f32 %v1240_v35, %v1070_v42 }
 0x39f   : > { %v1404_v57 = vpop.f32.mrf.mxu0 }
 0x3a0   : > { %v1098_v48 = vsel %vm1090_vm12, %v1076_v40, %v1094_v44  ;;  %vm1089_vm13 = vcmp.ge.f32.partialorder %v1071_v45, 0.0  ;;  %v1093_v49 = vmul.f32 0.0625, %v1071_v45  ;;  %v1086_v59 = vadd.f32 %v1404_v57, %v1240_v35 }
 0x3a1   : > { %v1130_v51 = vadd.f32 %v1126_v46, %v1098_v48  ;;  %v1080_v27 = vpop.f32.mrf.mxu0 }
 0x3a2   : > { %v1097_v52 = vsel %vm1089_vm13, %v1071_v45, %v1093_v49  ;;  %v1081_v61 = vadd.f32 %v1240_v35, %v1080_v27  ;;  %v1096_v3 = vmul.f32 0.0625, %v1086_v59  ;;  %vm1092_vm2 = vcmp.ge.f32.partialorder %v1086_v59, 0.0 }
 0x3a3   : > { %v1129_v53 = vadd.f32 %v1125_v50, %v1097_v52  ;;  %v1134_v54 = vmax.f32 %v1130_v51, 0.0 }
 0x3a4   : > { %v1095_v4 = vmul.f32 0.0625, %v1081_v61  ;;  %vm1091_vm3 = vcmp.ge.f32.partialorder %v1081_v61, 0.0  ;;  %v1100_v11 = vsel %vm1092_vm2, %v1086_v59, %v1096_v3 }
 0x3a5   : > { %v1133_v55 = vmax.f32 %v1129_v53, 0.0 }
 0x3a6   : > { %v1099_v12 = vsel %vm1091_vm3, %v1081_v61, %v1095_v4 }
 0x3a7   : > { %v1137_v56 = vadd.f32 %v1134_v54, %v1133_v55 }
 0x44c   : > { %v1366_v60 = vpop.f32.mrf.mxu1 }
 0x44d   : > { %v978_v24 = vadd.f32 %v1366_v60, %v1235_v26 }
 0x44e   : > { %v972_v62 = vpop.f32.mrf.mxu1 }
 0x44f   : > { %vm1104_vm15 = vcmp.ge.f32.partialorder %v978_v24, 0.0  ;;  %v1108_v0 = vmul.f32 0.0625, %v978_v24  ;;  %v973_v1 = vadd.f32 %v1235_v26, %v972_v62 }
 0x451   : > { %v1112_v5 = vsel %vm1104_vm15, %v978_v24, %v1108_v0  ;;  %vm1103_vm1 = vcmp.ge.f32.partialorder %v973_v1, 0.0  ;;  %v1107_v6 = vmul.f32 0.0625, %v973_v1 }
 0x452   : > { %v1128_v7 = vadd.f32 %v1124_v2, %v1112_v5 }
 0x453   : > { %v1111_v9 = vsel %vm1103_vm1, %v973_v1, %v1107_v6 }
 0x454   : > { %v1127_v10 = vadd.f32 %v1123_v8, %v1111_v9  ;;  %v1132_v13 = vadd.f32 %v1128_v7, %v1100_v11 }
 0x456   : > { %v1131_v14 = vadd.f32 %v1127_v10, %v1099_v12  ;;  %v1136_v34 = vmax.f32 %v1132_v13, 0.0 }
 0x458   : > { %v1135_v15 = vmax.f32 %v1131_v14, 0.0 }
 0x45a   : > { %v1138_v16 = vadd.f32 %v1137_v56, %v1135_v15 }
 0x45c   : > { %v1139_v17 = vadd.f32 %v1138_v16, %v1136_v34 }
 0x45e   : > { %v1141_v19 = vmul.f32 0.125, %v1139_v17 }
 0x460   : > { %v1142_v20 = vadd.f32 %v1141_v19, %v1140_v18 }
 0x462   : > { %1143 = vst [vmem:[#allocation8] sm:$0xff] %v1142_v20 }
 0x463   : > { %1519 = shalt.err (!%p1516_p5)
}
 0x464   : > { %1414 = dma.vmem_to_hbm [thread:$0]  (%p1428_p4), %s1152_s19, 128, %s1836_s9, [#allocation5]  }
 0x465   : > { %1543 = dma.done.wait (%p1428_p4), [#allocation5], 128  }
 0x466   : > { %1545 = vsyncadd (%p1428_p4), [#allocation5], 4294967168 }
 0x467 PF: > { %s22_s30 = sadd.s32 1, %s1548_s30  }
 0x468   : > { %p19_p8 = scmp.ge.s32.totalorder %s22_s30, 4  }
 0x46a   :  { %21 = sbr.rel (!%p19_p8) target bundleno = 3 (0x3), region = 96 }
 0x46f   :  { %1164 = vsyncpa [#allocation4], 1 }
 0x470   :  { %1166 = vsyncpa [#allocation4 + $0x1], 1 }
 0x471   :  { %1167 = vsyncpa [#allocation7], 1 }
 0x472   :  { %1168 = vsyncpa [#allocation5], 1 }
 0x473   :  { %1170 = vsyncpa [#allocation5 + $0x1], 1 }

</bundles_post_ra>
